<compile_context>
chip_gen: v6e
topology: v6e:2x2x1
jax: 0.10.0
libtpu: 0.0.40
codegen_flags: <defaults>
</compile_context>

<pallas_src>
from functools import partial

import jax
import jax.numpy as jnp
from jax.experimental import pallas as pl
from jax.experimental.pallas import tpu as pltpu


def _rnn_pred_kernel(x_ref, wih0_ref, wihr_ref, whh_ref, b_ref, wlin_ref,
                     blin_ref, out_ref, *, num_layers, seq_len):
    """Multi-layer tanh RNN + fused flatten/Linear, single invocation.

    x_ref   : (B, S, D)          batch-major input (as given by the caller)
    wih0_ref: (D, H)             layer-0 input weights (pre-transposed)
    wihr_ref: (max(L-1,1),H,H)   layers 1..L-1 input weights (pre-transposed)
    whh_ref : (L, H, H)          recurrent weights (pre-transposed)
    b_ref   : (L, 1, H)          combined bias (b_ih + b_hh) per layer
    wlin_ref: (S*H, O)           final Linear weight, transposed
    blin_ref: (1, O)             final Linear bias
    out_ref : (B, O)             output
    """
    S = seq_len
    L = num_layers
    B = x_ref.shape[0]
    D = x_ref.shape[2]
    H = whh_ref.shape[2]
    O = out_ref.shape[1]

    # ---- layer-0 input projection for the whole sequence: ONE matmul ------
    # Collapsing the leading dims keeps the last dim -> layout-free reshape.
    x_flat = x_ref[...].reshape(B * S, D)
    proj0 = (jnp.dot(x_flat, wih0_ref[...],
                     preferred_element_type=jnp.float32)
             + b_ref[0]).reshape(B, S, H)

    # Hoisted weight / bias loads (one load per layer, reused every step).
    whh = [whh_ref[l] for l in range(L)]
    wih = [wihr_ref[l] for l in range(L - 1)]
    bias = [b_ref[l] for l in range(L)]

    # ---- (t, l) wavefront; static loops -> fully unrolled at trace time ---
    # Critical path is ~S + L - 1 dependent (matmul + tanh) steps; the
    # per-diagonal matmuls are independent and pipeline through the MXU.
    h = [None] * L
    acc = jnp.zeros((B, O), jnp.float32)
    for t in range(S):
        inp = proj0[:, t, :]                       # includes layer-0 bias
        for l in range(L):
            if t == 0:
                # h_{-1} is zero: skip the recurrent matmul entirely.
                h[l] = jnp.tanh(inp)
            else:
                h[l] = jnp.tanh(inp + jnp.dot(h[l], whh[l],
                                              preferred_element_type=jnp.float32))
            if l < L - 1:
                # Next layer's input projection for this timestep (+ bias).
                inp = (jnp.dot(h[l], wih[l],
                               preferred_element_type=jnp.float32)
                       + bias[l + 1])
        # Fused flatten + Linear: the flatten column order is t*H + h, so the
        # t-th H-row block of wlin multiplies h_t of the last layer.  These
        # matmuls are off the recurrent chain and fill MXU slack.
        acc = acc + jnp.dot(h[L - 1], wlin_ref[t * H:(t + 1) * H, :],
                            preferred_element_type=jnp.float32)

    out_ref[...] = acc + blin_ref[...]


def init_params(key, input_dim, seq_length, hidden_size, num_layers,
                output_size):
    """Deterministic init matching the PyTorch parameter shapes."""
    ks = jax.random.split(key, 4 * num_layers + 2)
    k_rnn = 1.0 / jnp.sqrt(hidden_size)
    w_ih, w_hh, b_ih, b_hh = [], [], [], []
    for l in range(num_layers):
        in_dim = input_dim if l == 0 else hidden_size
        w_ih.append(jax.random.uniform(ks[4 * l + 0], (hidden_size, in_dim),
                                       jnp.float32, -k_rnn, k_rnn))
        w_hh.append(jax.random.uniform(ks[4 * l + 1],
                                       (hidden_size, hidden_size),
                                       jnp.float32, -k_rnn, k_rnn))
        b_ih.append(jax.random.uniform(ks[4 * l + 2], (hidden_size,),
                                       jnp.float32, -k_rnn, k_rnn))
        b_hh.append(jax.random.uniform(ks[4 * l + 3], (hidden_size,),
                                       jnp.float32, -k_rnn, k_rnn))
    k_lin = 1.0 / jnp.sqrt(hidden_size * seq_length)
    w_lin = jax.random.uniform(ks[-2], (output_size, hidden_size * seq_length),
                               jnp.float32, -k_lin, k_lin)
    b_lin = jax.random.uniform(ks[-1], (output_size,), jnp.float32,
                               -k_lin, k_lin)
    return dict(w_ih=w_ih, w_hh=w_hh, b_ih=b_ih, b_hh=b_hh,
                w_lin=w_lin, b_lin=b_lin)


def pack_params(params):
    """One-time weight packing (transposes / stacks / bias fusion).

    Done at load/init time so the per-call hot path is a single pallas_call
    dispatch with no extra XLA ops.
    """
    H = params['w_hh'][0].shape[0]
    L = len(params['w_hh'])
    wih0 = params['w_ih'][0].T                                # (D, H)
    if L > 1:
        wihr = jnp.stack([w.T for w in params['w_ih'][1:]])   # (L-1, H, H)
    else:
        wihr = jnp.zeros((1, H, H), jnp.float32)               # unused dummy
    whh = jnp.stack([w.T for w in params['w_hh']])              # (L, H, H)
    b = jnp.stack([(bi + bh).reshape(1, H)
                   for bi, bh in zip(params['b_ih'], params['b_hh'])])  # (L,1,H)
    wlin = params['w_lin'].T                                    # (S*H, O)
    blin = params['b_lin'].reshape(1, -1)                       # (1, O)
    return dict(wih0=wih0, wihr=wihr, whh=whh, b=b, wlin=wlin, blin=blin)


@jax.jit
def rnn_pred_forward(x, packed):
    """Pallas forward pass. x: (B, S, D) float32 -> (B, O) float32."""
    B, S, D = x.shape
    L, _, H = packed['whh'].shape
    O = packed['blin'].shape[1]

    args = (x, packed['wih0'], packed['wihr'], packed['whh'], packed['b'],
            packed['wlin'], packed['blin'])
    # Grid-less call: every operand (and the output) is a single whole-array
    # VMEM-resident block; working set is well under 1 MiB on v5e/v6e/v7x.
    vmem_spec = pl.BlockSpec(memory_space=pltpu.MemorySpace.VMEM)
    return pl.pallas_call(
        partial(_rnn_pred_kernel, num_layers=L, seq_len=S),
        in_specs=[vmem_spec] * len(args),
        out_specs=vmem_spec,
        out_shape=jax.ShapeDtypeStruct((B, O), jnp.float32),
    )(*args)


def rnn_pred_reference(x, params, hidden_size, num_layers):
    """Pure-JAX reference mirroring the PyTorch forward (h0 = zeros)."""
    B, S, D = x.shape
    H, L = hidden_size, num_layers
    layer_in = x
    for l in range(L):
        w_ih, w_hh = params['w_ih'][l], params['w_hh'][l]
        b_ih, b_hh = params['b_ih'][l], params['b_hh'][l]
        h = jnp.zeros((B, H), jnp.float32)
        outs = []
        for t in range(S):
            h = jnp.tanh(layer_in[:, t, :] @ w_ih.T + b_ih + h @ w_hh.T + b_hh)
            outs.append(h)
        layer_in = jnp.stack(outs, axis=1)                  # (B, S, H)
    flat = layer_in.reshape(B, S * H)
    return flat @ params['w_lin'].T + params['b_lin']


if __name__ == "__main__":
    # Small shapes implied by the module: batch=4, seq=8, input_dim=8,
    # hidden=32, layers=2, output=16.
    B, S, D, H, L, O = 4, 8, 8, 32, 2, 16

    key = jax.random.PRNGKey(0)
    k_x, k_p = jax.random.split(key)
    x = jax.random.normal(k_x, (B, S, D), jnp.float32)
    params = init_params(k_p, D, S, H, L, O)

    packed = pack_params(params)          # one-time, outside the hot path

    out = jax.block_until_ready(rnn_pred_forward(x, packed))

    ref = rnn_pred_reference(x, params, H, L)
    assert out.shape == (B, O)
    assert jnp.allclose(out, ref, rtol=1e-3, atol=1e-3), \
        f"mismatch: max abs err {jnp.max(jnp.abs(out - ref))}"

    print("KERNEL_OK")
</pallas_src>

<mosaic_0001>
module attributes {stable_mosaic.version = 11 : i64} {
  func.func @_rnn_pred_kernel(%arg0: memref<4x8x8xf32, #tpu.memory_space<vmem>>, %arg1: memref<8x32xf32, #tpu.memory_space<vmem>>, %arg2: memref<1x32x32xf32, #tpu.memory_space<vmem>>, %arg3: memref<2x32x32xf32, #tpu.memory_space<vmem>>, %arg4: memref<2x1x32xf32, #tpu.memory_space<vmem>>, %arg5: memref<256x16xf32, #tpu.memory_space<vmem>>, %arg6: memref<1x16xf32, #tpu.memory_space<vmem>>, %arg7: memref<4x16xf32, #tpu.memory_space<vmem>>) attributes {dimension_semantics = [], scalar_prefetch = 0 : i64, scratch_operands = 0 : i64, tpu.core_type = #tpu.core_type<tc>} {
    %c0 = arith.constant 0 : index
    %c0_0 = arith.constant 0 : index
    %c0_1 = arith.constant 0 : index
    %0 = vector.load %arg0[%c0, %c0_0, %c0_1] : memref<4x8x8xf32, #tpu.memory_space<vmem>>, vector<4x8x8xf32>
    %1 = vector.shape_cast %0 : vector<4x8x8xf32> to vector<32x8xf32>
    %c0_2 = arith.constant 0 : index
    %c0_3 = arith.constant 0 : index
    %2 = vector.load %arg1[%c0_2, %c0_3] : memref<8x32xf32, #tpu.memory_space<vmem>>, vector<8x32xf32>
    %cst = arith.constant dense<0.000000e+00> : vector<32x32xf32>
    %3 = tpu.matmul %1, %2, %cst {dimension_numbers = #tpu.dot_dimension_numbers<[1], [0], [0], [1], [0, 0, 1, 1], [], []>} : vector<32x8xf32>, vector<8x32xf32>, vector<32x32xf32> -> vector<32x32xf32>
    %c0_4 = arith.constant 0 : index
    %c0_5 = arith.constant 0 : index
    %c0_6 = arith.constant 0 : index
    %4 = vector.load %arg4[%c0_4, %c0_5, %c0_6] : memref<2x1x32xf32, #tpu.memory_space<vmem>>, vector<1x1x32xf32>
    %5 = vector.shape_cast %4 : vector<1x1x32xf32> to vector<1x32xf32>
    %6 = vector.broadcast %5 : vector<1x32xf32> to vector<32x32xf32>
    %7 = arith.addf %3, %6 : vector<32x32xf32>
    %8 = vector.shape_cast %7 : vector<32x32xf32> to vector<4x8x32xf32>
    %c0_7 = arith.constant 0 : index
    %c0_8 = arith.constant 0 : index
    %c0_9 = arith.constant 0 : index
    %9 = vector.load %arg3[%c0_7, %c0_8, %c0_9] : memref<2x32x32xf32, #tpu.memory_space<vmem>>, vector<1x32x32xf32>
    %10 = vector.shape_cast %9 : vector<1x32x32xf32> to vector<32x32xf32>
    %c1 = arith.constant 1 : index
    %c0_10 = arith.constant 0 : index
    %c0_11 = arith.constant 0 : index
    %11 = vector.load %arg3[%c1, %c0_10, %c0_11] : memref<2x32x32xf32, #tpu.memory_space<vmem>>, vector<1x32x32xf32>
    %12 = vector.shape_cast %11 : vector<1x32x32xf32> to vector<32x32xf32>
    %c0_12 = arith.constant 0 : index
    %c0_13 = arith.constant 0 : index
    %c0_14 = arith.constant 0 : index
    %13 = vector.load %arg2[%c0_12, %c0_13, %c0_14] : memref<1x32x32xf32, #tpu.memory_space<vmem>>, vector<1x32x32xf32>
    %14 = vector.shape_cast %13 : vector<1x32x32xf32> to vector<32x32xf32>
    %c1_15 = arith.constant 1 : index
    %c0_16 = arith.constant 0 : index
    %c0_17 = arith.constant 0 : index
    %15 = vector.load %arg4[%c1_15, %c0_16, %c0_17] : memref<2x1x32xf32, #tpu.memory_space<vmem>>, vector<1x1x32xf32>
    %16 = vector.shape_cast %15 : vector<1x1x32xf32> to vector<1x32xf32>
    %cst_18 = arith.constant 0.000000e+00 : f32
    %17 = vector.broadcast %cst_18 : f32 to vector<4x16xf32>
    %18 = vector.extract_strided_slice %8 {offsets = [0, 0, 0], sizes = [4, 1, 32], strides = [1, 1, 1]} : vector<4x8x32xf32> to vector<4x1x32xf32>
    %19 = vector.shape_cast %18 : vector<4x1x32xf32> to vector<4x32xf32>
    %20 = math.tanh %19 : vector<4x32xf32>
    %cst_19 = arith.constant dense<0.000000e+00> : vector<4x32xf32>
    %21 = tpu.matmul %20, %14, %cst_19 {dimension_numbers = #tpu.dot_dimension_numbers<[1], [0], [0], [1], [0, 0, 1, 1], [], []>} : vector<4x32xf32>, vector<32x32xf32>, vector<4x32xf32> -> vector<4x32xf32>
    %22 = vector.broadcast %16 : vector<1x32xf32> to vector<4x32xf32>
    %23 = arith.addf %21, %22 : vector<4x32xf32>
    %24 = math.tanh %23 : vector<4x32xf32>
    %c0_20 = arith.constant 0 : index
    %c0_21 = arith.constant 0 : index
    %25 = vector.load %arg5[%c0_20, %c0_21] : memref<256x16xf32, #tpu.memory_space<vmem>>, vector<32x16xf32>
    %cst_22 = arith.constant dense<0.000000e+00> : vector<4x16xf32>
    %26 = tpu.matmul %24, %25, %cst_22 {dimension_numbers = #tpu.dot_dimension_numbers<[1], [0], [0], [1], [0, 0, 1, 1], [], []>} : vector<4x32xf32>, vector<32x16xf32>, vector<4x16xf32> -> vector<4x16xf32>
    %27 = arith.addf %17, %26 : vector<4x16xf32>
    %28 = vector.extract_strided_slice %8 {offsets = [0, 1, 0], sizes = [4, 1, 32], strides = [1, 1, 1]} : vector<4x8x32xf32> to vector<4x1x32xf32>
    %29 = vector.shape_cast %28 : vector<4x1x32xf32> to vector<4x32xf32>
    %cst_23 = arith.constant dense<0.000000e+00> : vector<4x32xf32>
    %30 = tpu.matmul %20, %10, %cst_23 {dimension_numbers = #tpu.dot_dimension_numbers<[1], [0], [0], [1], [0, 0, 1, 1], [], []>} : vector<4x32xf32>, vector<32x32xf32>, vector<4x32xf32> -> vector<4x32xf32>
    %31 = arith.addf %29, %30 : vector<4x32xf32>
    %32 = math.tanh %31 : vector<4x32xf32>
    %cst_24 = arith.constant dense<0.000000e+00> : vector<4x32xf32>
    %33 = tpu.matmul %32, %14, %cst_24 {dimension_numbers = #tpu.dot_dimension_numbers<[1], [0], [0], [1], [0, 0, 1, 1], [], []>} : vector<4x32xf32>, vector<32x32xf32>, vector<4x32xf32> -> vector<4x32xf32>
    %34 = vector.broadcast %16 : vector<1x32xf32> to vector<4x32xf32>
    %35 = arith.addf %33, %34 : vector<4x32xf32>
    %cst_25 = arith.constant dense<0.000000e+00> : vector<4x32xf32>
    %36 = tpu.matmul %24, %12, %cst_25 {dimension_numbers = #tpu.dot_dimension_numbers<[1], [0], [0], [1], [0, 0, 1, 1], [], []>} : vector<4x32xf32>, vector<32x32xf32>, vector<4x32xf32> -> vector<4x32xf32>
    %37 = arith.addf %35, %36 : vector<4x32xf32>
    %38 = math.tanh %37 : vector<4x32xf32>
    %c32 = arith.constant 32 : index
    %c0_26 = arith.constant 0 : index
    %39 = vector.load %arg5[%c32, %c0_26] : memref<256x16xf32, #tpu.memory_space<vmem>>, vector<32x16xf32>
    %cst_27 = arith.constant dense<0.000000e+00> : vector<4x16xf32>
    %40 = tpu.matmul %38, %39, %cst_27 {dimension_numbers = #tpu.dot_dimension_numbers<[1], [0], [0], [1], [0, 0, 1, 1], [], []>} : vector<4x32xf32>, vector<32x16xf32>, vector<4x16xf32> -> vector<4x16xf32>
    %41 = arith.addf %27, %40 : vector<4x16xf32>
    %42 = vector.extract_strided_slice %8 {offsets = [0, 2, 0], sizes = [4, 1, 32], strides = [1, 1, 1]} : vector<4x8x32xf32> to vector<4x1x32xf32>
    %43 = vector.shape_cast %42 : vector<4x1x32xf32> to vector<4x32xf32>
    %cst_28 = arith.constant dense<0.000000e+00> : vector<4x32xf32>
    %44 = tpu.matmul %32, %10, %cst_28 {dimension_numbers = #tpu.dot_dimension_numbers<[1], [0], [0], [1], [0, 0, 1, 1], [], []>} : vector<4x32xf32>, vector<32x32xf32>, vector<4x32xf32> -> vector<4x32xf32>
    %45 = arith.addf %43, %44 : vector<4x32xf32>
    %46 = math.tanh %45 : vector<4x32xf32>
    %cst_29 = arith.constant dense<0.000000e+00> : vector<4x32xf32>
    %47 = tpu.matmul %46, %14, %cst_29 {dimension_numbers = #tpu.dot_dimension_numbers<[1], [0], [0], [1], [0, 0, 1, 1], [], []>} : vector<4x32xf32>, vector<32x32xf32>, vector<4x32xf32> -> vector<4x32xf32>
    %48 = vector.broadcast %16 : vector<1x32xf32> to vector<4x32xf32>
    %49 = arith.addf %47, %48 : vector<4x32xf32>
    %cst_30 = arith.constant dense<0.000000e+00> : vector<4x32xf32>
    %50 = tpu.matmul %38, %12, %cst_30 {dimension_numbers = #tpu.dot_dimension_numbers<[1], [0], [0], [1], [0, 0, 1, 1], [], []>} : vector<4x32xf32>, vector<32x32xf32>, vector<4x32xf32> -> vector<4x32xf32>
    %51 = arith.addf %49, %50 : vector<4x32xf32>
    %52 = math.tanh %51 : vector<4x32xf32>
    %c64 = arith.constant 64 : index
    %c0_31 = arith.constant 0 : index
    %53 = vector.load %arg5[%c64, %c0_31] : memref<256x16xf32, #tpu.memory_space<vmem>>, vector<32x16xf32>
    %cst_32 = arith.constant dense<0.000000e+00> : vector<4x16xf32>
    %54 = tpu.matmul %52, %53, %cst_32 {dimension_numbers = #tpu.dot_dimension_numbers<[1], [0], [0], [1], [0, 0, 1, 1], [], []>} : vector<4x32xf32>, vector<32x16xf32>, vector<4x16xf32> -> vector<4x16xf32>
    %55 = arith.addf %41, %54 : vector<4x16xf32>
    %56 = vector.extract_strided_slice %8 {offsets = [0, 3, 0], sizes = [4, 1, 32], strides = [1, 1, 1]} : vector<4x8x32xf32> to vector<4x1x32xf32>
    %57 = vector.shape_cast %56 : vector<4x1x32xf32> to vector<4x32xf32>
    %cst_33 = arith.constant dense<0.000000e+00> : vector<4x32xf32>
    %58 = tpu.matmul %46, %10, %cst_33 {dimension_numbers = #tpu.dot_dimension_numbers<[1], [0], [0], [1], [0, 0, 1, 1], [], []>} : vector<4x32xf32>, vector<32x32xf32>, vector<4x32xf32> -> vector<4x32xf32>
    %59 = arith.addf %57, %58 : vector<4x32xf32>
    %60 = math.tanh %59 : vector<4x32xf32>
    %cst_34 = arith.constant dense<0.000000e+00> : vector<4x32xf32>
    %61 = tpu.matmul %60, %14, %cst_34 {dimension_numbers = #tpu.dot_dimension_numbers<[1], [0], [0], [1], [0, 0, 1, 1], [], []>} : vector<4x32xf32>, vector<32x32xf32>, vector<4x32xf32> -> vector<4x32xf32>
    %62 = vector.broadcast %16 : vector<1x32xf32> to vector<4x32xf32>
    %63 = arith.addf %61, %62 : vector<4x32xf32>
    %cst_35 = arith.constant dense<0.000000e+00> : vector<4x32xf32>
    %64 = tpu.matmul %52, %12, %cst_35 {dimension_numbers = #tpu.dot_dimension_numbers<[1], [0], [0], [1], [0, 0, 1, 1], [], []>} : vector<4x32xf32>, vector<32x32xf32>, vector<4x32xf32> -> vector<4x32xf32>
    %65 = arith.addf %63, %64 : vector<4x32xf32>
    %66 = math.tanh %65 : vector<4x32xf32>
    %c96 = arith.constant 96 : index
    %c0_36 = arith.constant 0 : index
    %67 = vector.load %arg5[%c96, %c0_36] : memref<256x16xf32, #tpu.memory_space<vmem>>, vector<32x16xf32>
    %cst_37 = arith.constant dense<0.000000e+00> : vector<4x16xf32>
    %68 = tpu.matmul %66, %67, %cst_37 {dimension_numbers = #tpu.dot_dimension_numbers<[1], [0], [0], [1], [0, 0, 1, 1], [], []>} : vector<4x32xf32>, vector<32x16xf32>, vector<4x16xf32> -> vector<4x16xf32>
    %69 = arith.addf %55, %68 : vector<4x16xf32>
    %70 = vector.extract_strided_slice %8 {offsets = [0, 4, 0], sizes = [4, 1, 32], strides = [1, 1, 1]} : vector<4x8x32xf32> to vector<4x1x32xf32>
    %71 = vector.shape_cast %70 : vector<4x1x32xf32> to vector<4x32xf32>
    %cst_38 = arith.constant dense<0.000000e+00> : vector<4x32xf32>
    %72 = tpu.matmul %60, %10, %cst_38 {dimension_numbers = #tpu.dot_dimension_numbers<[1], [0], [0], [1], [0, 0, 1, 1], [], []>} : vector<4x32xf32>, vector<32x32xf32>, vector<4x32xf32> -> vector<4x32xf32>
    %73 = arith.addf %71, %72 : vector<4x32xf32>
    %74 = math.tanh %73 : vector<4x32xf32>
    %cst_39 = arith.constant dense<0.000000e+00> : vector<4x32xf32>
    %75 = tpu.matmul %74, %14, %cst_39 {dimension_numbers = #tpu.dot_dimension_numbers<[1], [0], [0], [1], [0, 0, 1, 1], [], []>} : vector<4x32xf32>, vector<32x32xf32>, vector<4x32xf32> -> vector<4x32xf32>
    %76 = vector.broadcast %16 : vector<1x32xf32> to vector<4x32xf32>
    %77 = arith.addf %75, %76 : vector<4x32xf32>
    %cst_40 = arith.constant dense<0.000000e+00> : vector<4x32xf32>
    %78 = tpu.matmul %66, %12, %cst_40 {dimension_numbers = #tpu.dot_dimension_numbers<[1], [0], [0], [1], [0, 0, 1, 1], [], []>} : vector<4x32xf32>, vector<32x32xf32>, vector<4x32xf32> -> vector<4x32xf32>
    %79 = arith.addf %77, %78 : vector<4x32xf32>
    %80 = math.tanh %79 : vector<4x32xf32>
    %c128 = arith.constant 128 : index
    %c0_41 = arith.constant 0 : index
    %81 = vector.load %arg5[%c128, %c0_41] : memref<256x16xf32, #tpu.memory_space<vmem>>, vector<32x16xf32>
    %cst_42 = arith.constant dense<0.000000e+00> : vector<4x16xf32>
    %82 = tpu.matmul %80, %81, %cst_42 {dimension_numbers = #tpu.dot_dimension_numbers<[1], [0], [0], [1], [0, 0, 1, 1], [], []>} : vector<4x32xf32>, vector<32x16xf32>, vector<4x16xf32> -> vector<4x16xf32>
    %83 = arith.addf %69, %82 : vector<4x16xf32>
    %84 = vector.extract_strided_slice %8 {offsets = [0, 5, 0], sizes = [4, 1, 32], strides = [1, 1, 1]} : vector<4x8x32xf32> to vector<4x1x32xf32>
    %85 = vector.shape_cast %84 : vector<4x1x32xf32> to vector<4x32xf32>
    %cst_43 = arith.constant dense<0.000000e+00> : vector<4x32xf32>
    %86 = tpu.matmul %74, %10, %cst_43 {dimension_numbers = #tpu.dot_dimension_numbers<[1], [0], [0], [1], [0, 0, 1, 1], [], []>} : vector<4x32xf32>, vector<32x32xf32>, vector<4x32xf32> -> vector<4x32xf32>
    %87 = arith.addf %85, %86 : vector<4x32xf32>
    %88 = math.tanh %87 : vector<4x32xf32>
    %cst_44 = arith.constant dense<0.000000e+00> : vector<4x32xf32>
    %89 = tpu.matmul %88, %14, %cst_44 {dimension_numbers = #tpu.dot_dimension_numbers<[1], [0], [0], [1], [0, 0, 1, 1], [], []>} : vector<4x32xf32>, vector<32x32xf32>, vector<4x32xf32> -> vector<4x32xf32>
    %90 = vector.broadcast %16 : vector<1x32xf32> to vector<4x32xf32>
    %91 = arith.addf %89, %90 : vector<4x32xf32>
    %cst_45 = arith.constant dense<0.000000e+00> : vector<4x32xf32>
    %92 = tpu.matmul %80, %12, %cst_45 {dimension_numbers = #tpu.dot_dimension_numbers<[1], [0], [0], [1], [0, 0, 1, 1], [], []>} : vector<4x32xf32>, vector<32x32xf32>, vector<4x32xf32> -> vector<4x32xf32>
    %93 = arith.addf %91, %92 : vector<4x32xf32>
    %94 = math.tanh %93 : vector<4x32xf32>
    %c160 = arith.constant 160 : index
    %c0_46 = arith.constant 0 : index
    %95 = vector.load %arg5[%c160, %c0_46] : memref<256x16xf32, #tpu.memory_space<vmem>>, vector<32x16xf32>
    %cst_47 = arith.constant dense<0.000000e+00> : vector<4x16xf32>
    %96 = tpu.matmul %94, %95, %cst_47 {dimension_numbers = #tpu.dot_dimension_numbers<[1], [0], [0], [1], [0, 0, 1, 1], [], []>} : vector<4x32xf32>, vector<32x16xf32>, vector<4x16xf32> -> vector<4x16xf32>
    %97 = arith.addf %83, %96 : vector<4x16xf32>
    %98 = vector.extract_strided_slice %8 {offsets = [0, 6, 0], sizes = [4, 1, 32], strides = [1, 1, 1]} : vector<4x8x32xf32> to vector<4x1x32xf32>
    %99 = vector.shape_cast %98 : vector<4x1x32xf32> to vector<4x32xf32>
    %cst_48 = arith.constant dense<0.000000e+00> : vector<4x32xf32>
    %100 = tpu.matmul %88, %10, %cst_48 {dimension_numbers = #tpu.dot_dimension_numbers<[1], [0], [0], [1], [0, 0, 1, 1], [], []>} : vector<4x32xf32>, vector<32x32xf32>, vector<4x32xf32> -> vector<4x32xf32>
    %101 = arith.addf %99, %100 : vector<4x32xf32>
    %102 = math.tanh %101 : vector<4x32xf32>
    %cst_49 = arith.constant dense<0.000000e+00> : vector<4x32xf32>
    %103 = tpu.matmul %102, %14, %cst_49 {dimension_numbers = #tpu.dot_dimension_numbers<[1], [0], [0], [1], [0, 0, 1, 1], [], []>} : vector<4x32xf32>, vector<32x32xf32>, vector<4x32xf32> -> vector<4x32xf32>
    %104 = vector.broadcast %16 : vector<1x32xf32> to vector<4x32xf32>
    %105 = arith.addf %103, %104 : vector<4x32xf32>
    %cst_50 = arith.constant dense<0.000000e+00> : vector<4x32xf32>
    %106 = tpu.matmul %94, %12, %cst_50 {dimension_numbers = #tpu.dot_dimension_numbers<[1], [0], [0], [1], [0, 0, 1, 1], [], []>} : vector<4x32xf32>, vector<32x32xf32>, vector<4x32xf32> -> vector<4x32xf32>
    %107 = arith.addf %105, %106 : vector<4x32xf32>
    %108 = math.tanh %107 : vector<4x32xf32>
    %c192 = arith.constant 192 : index
    %c0_51 = arith.constant 0 : index
    %109 = vector.load %arg5[%c192, %c0_51] : memref<256x16xf32, #tpu.memory_space<vmem>>, vector<32x16xf32>
    %cst_52 = arith.constant dense<0.000000e+00> : vector<4x16xf32>
    %110 = tpu.matmul %108, %109, %cst_52 {dimension_numbers = #tpu.dot_dimension_numbers<[1], [0], [0], [1], [0, 0, 1, 1], [], []>} : vector<4x32xf32>, vector<32x16xf32>, vector<4x16xf32> -> vector<4x16xf32>
    %111 = arith.addf %97, %110 : vector<4x16xf32>
    %112 = vector.extract_strided_slice %8 {offsets = [0, 7, 0], sizes = [4, 1, 32], strides = [1, 1, 1]} : vector<4x8x32xf32> to vector<4x1x32xf32>
    %113 = vector.shape_cast %112 : vector<4x1x32xf32> to vector<4x32xf32>
    %cst_53 = arith.constant dense<0.000000e+00> : vector<4x32xf32>
    %114 = tpu.matmul %102, %10, %cst_53 {dimension_numbers = #tpu.dot_dimension_numbers<[1], [0], [0], [1], [0, 0, 1, 1], [], []>} : vector<4x32xf32>, vector<32x32xf32>, vector<4x32xf32> -> vector<4x32xf32>
    %115 = arith.addf %113, %114 : vector<4x32xf32>
    %116 = math.tanh %115 : vector<4x32xf32>
    %cst_54 = arith.constant dense<0.000000e+00> : vector<4x32xf32>
    %117 = tpu.matmul %116, %14, %cst_54 {dimension_numbers = #tpu.dot_dimension_numbers<[1], [0], [0], [1], [0, 0, 1, 1], [], []>} : vector<4x32xf32>, vector<32x32xf32>, vector<4x32xf32> -> vector<4x32xf32>
    %118 = vector.broadcast %16 : vector<1x32xf32> to vector<4x32xf32>
    %119 = arith.addf %117, %118 : vector<4x32xf32>
    %cst_55 = arith.constant dense<0.000000e+00> : vector<4x32xf32>
    %120 = tpu.matmul %108, %12, %cst_55 {dimension_numbers = #tpu.dot_dimension_numbers<[1], [0], [0], [1], [0, 0, 1, 1], [], []>} : vector<4x32xf32>, vector<32x32xf32>, vector<4x32xf32> -> vector<4x32xf32>
    %121 = arith.addf %119, %120 : vector<4x32xf32>
    %122 = math.tanh %121 : vector<4x32xf32>
    %c224 = arith.constant 224 : index
    %c0_56 = arith.constant 0 : index
    %123 = vector.load %arg5[%c224, %c0_56] : memref<256x16xf32, #tpu.memory_space<vmem>>, vector<32x16xf32>
    %cst_57 = arith.constant dense<0.000000e+00> : vector<4x16xf32>
    %124 = tpu.matmul %122, %123, %cst_57 {dimension_numbers = #tpu.dot_dimension_numbers<[1], [0], [0], [1], [0, 0, 1, 1], [], []>} : vector<4x32xf32>, vector<32x16xf32>, vector<4x16xf32> -> vector<4x16xf32>
    %125 = arith.addf %111, %124 : vector<4x16xf32>
    %c0_58 = arith.constant 0 : index
    %c0_59 = arith.constant 0 : index
    %126 = vector.load %arg6[%c0_58, %c0_59] : memref<1x16xf32, #tpu.memory_space<vmem>>, vector<1x16xf32>
    %127 = vector.broadcast %126 : vector<1x16xf32> to vector<4x16xf32>
    %128 = arith.addf %125, %127 : vector<4x16xf32>
    %c0_60 = arith.constant 0 : index
    %c0_61 = arith.constant 0 : index
    %129 = vector.load %arg7[%c0_60, %c0_61] : memref<4x16xf32, #tpu.memory_space<vmem>>, vector<4x16xf32>
    tpu.vector_store %arg7[%c0_60, %c0_61], %128 {strides = array<i32>} : memref<4x16xf32, #tpu.memory_space<vmem>>, vector<4x16xf32>,
    return
  }
}

</mosaic_0001>

<bundles_post_ra>
// kernel: rnn_pred_forward.1
= control target key start
LH: loop header
LB: loop body
LE: loop exit
PB: predicated region body
PF: predicated region fallthrough
CT: control target
= control target key end

     0   :  { %vm39_vm0 = vcmask 64512   ;;  %s3854_s0 = inlined_call_operand.vmem [shape: f32[4,8,8], index: 0, kind: input, shape index: {}]   ;;  %s3855_s1 = inlined_call_operand.vmem [shape: f32[8,32], index: 1, kind: input, shape index: {}]   ;;  %s3856_s2 = inlined_call_operand.vmem [shape: f32[1,32,32], index: 2, kind: input, shape index: {}]   ;;  %s3857_s3 = inlined_call_operand.vmem [shape: f32[2,32,32], index: 3, kind: input, shape index: {}]   ;;  %s3858_s4 = inlined_call_operand.vmem [shape: f32[2,1,32], index: 4, kind: input, shape index: {}]   ;;  %s3859_s5 = inlined_call_operand.vmem [shape: f32[256,16], index: 5, kind: input, shape index: {}]   ;;  %s3860_s6 = inlined_call_operand.vmem [shape: f32[1,16], index: 6, kind: input, shape index: {}]   ;;  %s3861_s7 = inlined_call_operand.hbm [shape: f32[4,16], index: 7, kind: output, shape index: {}]  }
   0x1   :  { %v31_v0 = vld [vmem:[%s3855_s1] sm:$0xff]  ;;  %v28_v2 = vld [vmem:[%s3854_s0 + $0x8] sm:$0xff]  ;;  %v29_v3 = vld [vmem:[%s3854_s0 + $0x10] sm:$0xff] }
   0x2   :  { %v27_v1 = vld [vmem:[%s3854_s0] sm:$0xff]  ;;  %2780 = vmatprep.subr.mxu0 %v31_v0 }
   0x3   :  { %2782 = vmatprep.mubr.msk.f32.mxu0 %vm39_vm0, %v27_v1 }
   0x4   :  { %12 = vsyncpa [#allocation3], 0  ;;  %2781 = vmatpush3.msra.mxu0 %v31_v0  ;;  %v30_v4 = vld [vmem:[%s3854_s0 + $0x18] sm:$0xff]  ;;  %v3228_v7 = vmov 0.0   ;;  %v3301_v8 = vld [vmem:[%s3857_s3 + $0x10] sm:$0xff]  ;;  %vm3229_vm1 = vmmov 0  }
   0x5   :  { %2783 = vmatmul.mubr.msk.f32.vlgmr.msra.gmra.mxu0 %vm39_vm0, %v28_v2  ;;  %v3289_v5 = vld [vmem:[%s3857_s3 + $0x18] sm:$0xff]  ;;  %2799 = vmatprep.subr.mxu0 %v3228_v7  ;;  %v3306_v9 = vld [vmem:[%s3856_s2 + $0x10] sm:$0xff]  ;;  %v3315_v10 = vld [vmem:[%s3857_s3 + $0x8] sm:$0xff]  ;;  %vm167_vm2 = vcmask 1041409   ;;  %vm170_vm3 = vcmask 1042434   ;;  %vm173_vm4 = vcmask 1043459  }
   0x6   :  { %2785 = vmatprep.mubr.msk.f32.mxu0 %vm39_vm0, %v29_v3  ;;  %v3294_v6 = vld [vmem:[%s3856_s2 + $0x18] sm:$0xff]  ;;  %2788 = vmatprep.subr.mxu1 %v3228_v7  ;;  %v3320_v11 = vld [vmem:[%s3856_s2 + $0x8] sm:$0xff]  ;;  %v3329_v12 = vld [vmem:[%s3857_s3] sm:$0xff]  ;;  %vm175_vm5 = vcmask 261120   ;;  %s3230_s9 = smov [#allocation2]   ;;  %vm2567_vm6 = vcmask 125952  }
   0x7   :  { %2800 = vmatpush3.msra.mxu0 %v3289_v5  ;;  %2789 = vmatpush3.msra.mxu1 %v3294_v6  ;;  %v3334_v13 = vld [vmem:[%s3856_s2] sm:$0xff]  ;;  %v3383_v33 = vld [vmem:[%s3857_s3 + $0x38] sm:$0xff]  ;;  %v3390_v34 = vld [vmem:[%s3857_s3 + $0x30] sm:$0xff]  ;;  %s2575_s10 = sshll.u32 %s3230_s9, 4  ;;  %s2576_s10 = int_to_ptr.vmem [resolvable:$true] %s2575_s10 }
   0x8   :  { %2801 = vmatprep.subr.mxu0 %v3228_v7  ;;  %2790 = vmatprep.subr.mxu1 %v3228_v7  ;;  %v2583_v14 = vld [vmem:[%s3858_s4] ss:$0 sm:$0xff]  ;;  %v3397_v35 = vld [vmem:[%s3857_s3 + $0x28] sm:$0xff]  ;;  %v3411_v37 = vld [vmem:[%s3858_s4 + $0x1] ss:$0 sm:$0xff]  ;;  %p3211_p1 = scmp.lt.s32.totalorder %s2576_s10, %s2576_s10 }
   0x9   :  { %2786 = vmatmul.mubr.msk.f32.gmra.mxu0 %vm39_vm0, %v30_v4  ;;  %2791 = vmatpush3.msra.mxu1 %v3306_v9  ;;  %v3404_v36 = vld [vmem:[%s3857_s3 + $0x20] sm:$0xff]  ;;  %v252_v50 = vld [vmem:[%s3859_s5 + $0x18] sm:$0xff]  ;;  %v251_v53 = vld [vmem:[%s3859_s5 + $0x10] sm:$0xff] }
   0xa   :  { %2802 = vmatpush3.msra.mxu0 %v3301_v8  ;;  %2792 = vmatprep.subr.mxu1 %v3228_v7  ;;  %v250_v57 = vld [vmem:[%s3859_s5 + $0x8] sm:$0xff]  ;;  %v249_v60 = vld [vmem:[%s3859_s5] sm:$0xff]  ;;  %v499_v1 = vld [vmem:[%s3859_s5 + $0x38] sm:$0xff] }
   0xb   :  { %2803 = vmatprep.subr.mxu0 %v3228_v7  ;;  %2793 = vmatpush3.msra.mxu1 %v3320_v11  ;;  %v498_v2 = vld [vmem:[%s3859_s5 + $0x30] sm:$0xff]  ;;  %v497_v3 = vld [vmem:[%s3859_s5 + $0x28] sm:$0xff]  ;;  %v496_v4 = vld [vmem:[%s3859_s5 + $0x20] sm:$0xff] }
   0xc   :  { %2804 = vmatpush3.msra.mxu0 %v3315_v10  ;;  %2794 = vmatprep.subr.mxu1 %v3228_v7 }
   0xd   :  { %2805 = vmatprep.subr.mxu0 %v3228_v7  ;;  %2795 = vmatpush3.msra.mxu1 %v3334_v13 }
   0xe   :  { %2806 = vmatpush3.msra.mxu0 %v3329_v12  ;;  %2796 = vmatprep.mubr.msk.f32.mxu1 %vm3229_vm1, %v3228_v7 }
   0xf   :  { %2807 = vmatprep.mubr.msk.f32.mxu0 %vm3229_vm1, %v3228_v7  ;;  %2821 = vmatprep.subr.mxu0 %v3228_v7 }
  0x10   :  { %2810 = vmatprep.subr.mxu1 %v3228_v7 }
  0xc5   :  { %v2784_v15 = vpop.f32.mrf.mxu0 }
  0xc6   :  { %v3351_v16 = vadd.f32 %v2784_v15, %v2583_v14 }
  0xc7   :  { %v118_v17 = vpop.f32.mrf.mxu0 }
  0xc8   :  { %v3353_v18 = vadd.f32 %v2583_v14, %v118_v17  ;;  %3121 = vtanh.f32 %v3351_v16 }
  0xc9   :  { %v2787_v19 = vpop.f32.mrf.mxu0 }
  0xca   :  { %v3356_v20 = vadd.f32 %v2787_v19, %v2583_v14  ;;  %3123 = vtanh.f32 %v3353_v18 }
  0xcb   :  { %v128_v21 = vpop.f32.mrf.mxu0 }
  0xcc   :  { %v3359_v22 = vadd.f32 %v2583_v14, %v128_v21  ;;  %3125 = vtanh.f32 %v3356_v20 }
  0xce   :  { %3127 = vtanh.f32 %v3359_v22 }
  0xd5   :  { %v3122_v23 = vpop.eup %3121 }
  0xd6   :  { %v166_v25 = vrot.slane %v3122_v23, 7 }
  0xd7   :  { %v3124_v24 = vpop.eup %3123 }
  0xd8   :  { %v168_v29 = vsel %vm167_vm2, %v166_v25, %v3124_v24 }
  0xd9   :  { %v3126_v26 = vpop.eup %3125 }
  0xda   :  { %v172_v30 = vrot.slane %v3126_v26, 5 }
  0xdb   :  { %v3128_v27 = vpop.eup %3127 }
  0xdc   :  { %v169_v28 = vrot.slane %v3128_v27, 6 }
  0xde   :  { %v171_v31 = vsel %vm170_vm3, %v169_v28, %v168_v29 }
  0xdf   :  { %v174_v32 = vsel %vm173_vm4, %v172_v30, %v171_v31 }
  0xe0   :  { %2797 = vmatmul.mubr.msk.f32.vlgmr.msra.gmra.mxu1 %vm175_vm5, %v174_v32  ;;  %2808 = vmatmul.mubr.msk.f32.vlgmr.msra.gmra.mxu0 %vm175_vm5, %v174_v32 }
  0xe1   :  { %2829 = vmatprep.mubr.msk.f32.mxu0 %vm3229_vm1, %v3228_v7  ;;  %2811 = vmatpush3.msra.mxu1 %v3294_v6 }
  0xe2   :  { %2812 = vmatprep.subr.mxu1 %v3228_v7  ;;  %2818 = vmatprep.mubr.msk.f32.mxu1 %vm3229_vm1, %v3228_v7 }
  0xe3   :  { %2813 = vmatpush3.msra.mxu1 %v3306_v9  ;;  %2822 = vmatpush3.msra.mxu0 %v3383_v33 }
  0xe4   :  { %2814 = vmatprep.subr.mxu1 %v3228_v7  ;;  %2823 = vmatprep.subr.mxu0 %v3228_v7 }
  0xe5   :  { %2815 = vmatpush3.msra.mxu1 %v3320_v11  ;;  %2824 = vmatpush3.msra.mxu0 %v3390_v34 }
  0xe6   :  { %2816 = vmatprep.subr.mxu1 %v3228_v7  ;;  %2825 = vmatprep.subr.mxu0 %v3228_v7 }
  0xe7   :  { %2817 = vmatpush3.msra.mxu1 %v3334_v13  ;;  %2826 = vmatpush3.msra.mxu0 %v3397_v35 }
  0xe8   :  { %2832 = vmatprep.subr.mxu1 %v3228_v7  ;;  %2827 = vmatprep.subr.mxu0 %v3228_v7 }
  0xe9   :  { %2828 = vmatpush3.msra.mxu0 %v3404_v36 }
  0xea   :  { %2843 = vmatprep.subr.mxu0 %v3228_v7 }
 0x1a0   :  { %v244_v38 = vpop.f32.mrf.mxu1  ;;  %v319_v39 = vpop.f32.mrf.mxu0 }
 0x1a1   :  { %v245_v40 = vadd.f32 %v3411_v37, %v244_v38  ;;  %v324_v41 = vrot.slane %v319_v39, 7  ;;  %v325_v42 = vrot.slane %v319_v39, 1  ;;  %v326_v43 = vrot.slane %v319_v39, 2 }
 0x1a2   :  { %v332_v44 = vadd.f32 %v319_v39, %v3351_v16  ;;  %v2798_v45 = vpop.f32.mrf.mxu1  ;;  %v2809_v46 = vpop.f32.mrf.mxu0 }
 0x1a3   :  { %3129 = vtanh.f32 %v245_v40  ;;  %v331_v47 = vadd.f32 %v324_v41, %v3353_v18  ;;  %v333_v48 = vadd.f32 %v325_v42, %v3359_v22  ;;  %v334_v49 = vadd.f32 %v326_v43, %v3356_v20 }
 0x1a4   :  { %3131 = vtanh.f32 %v332_v44 }
 0x1a5   :  { %3133 = vtanh.f32 %v331_v47 }
 0x1a6   :  { %3135 = vtanh.f32 %v333_v48 }
 0x1a7   :  { %3137 = vtanh.f32 %v334_v49 }
 0x1b0   :  { %v3130_v51 = vpop.eup %3129 }
 0x1b1   :  { %v3132_v52 = vpop.eup %3131  ;;  %2830 = vmatmul.mubr.msk.f32.vlgmr.msra.gmra.mxu0 %vm175_vm5, %v3130_v51 }
 0x1b2   :  { %v3134_v54 = vpop.eup %3133  ;;  %2844 = vmatpush3.msra.mxu0 %v252_v50  ;;  %2851 = vmatprep.mubr.msk.f32.mxu0 %vm3229_vm1, %v3228_v7 }
 0x1b3   :  { %v3136_v55 = vpop.eup %3135  ;;  %v343_v56 = vrot.slane %v3134_v54, 1  ;;  %2845 = vmatprep.subr.mxu0 %v3228_v7 }
 0x1b4   :  { %v3138_v58 = vpop.eup %3137  ;;  %v345_v59 = vrot.slane %v3136_v55, 7  ;;  %2846 = vmatpush3.msra.mxu0 %v251_v53  ;;  %v886_v55 = vld [vmem:[%s3859_s5 + $0x58] sm:$0xff] }
 0x1b5   :  { %2847 = vmatprep.subr.mxu0 %v3228_v7  ;;  %v344_v61 = vsel %vm167_vm2, %v3132_v52, %v343_v56  ;;  %v347_v62 = vrot.slane %v3138_v58, 6  ;;  %v885_v56 = vld [vmem:[%s3859_s5 + $0x50] sm:$0xff]  ;;  %v883_v58 = vld [vmem:[%s3859_s5 + $0x40] sm:$0xff] }
 0x1b6   :  { %2848 = vmatpush3.msra.mxu0 %v250_v57  ;;  %v346_v63 = vsel %vm170_vm3, %v345_v59, %v344_v61  ;;  %v884_v57 = vld [vmem:[%s3859_s5 + $0x48] sm:$0xff] }
 0x1b7   :  { %2849 = vmatprep.subr.mxu0 %v3228_v7  ;;  %v348_v0 = vsel %vm173_vm4, %v347_v62, %v346_v63 }
 0x1b8   :  { %2850 = vmatpush3.msra.mxu0 %v249_v60  ;;  %2819 = vmatmul.mubr.msk.f32.vlgmr.msra.gmra.mxu1 %vm175_vm5, %v348_v0 }
 0x1b9   :  { %2852 = vmatmul.mubr.msk.f32.vlgmr.msra.gmra.mxu0 %vm175_vm5, %v3130_v51  ;;  %2840 = vmatprep.mubr.msk.f32.mxu1 %vm3229_vm1, %v3228_v7 }
 0x1ba   :  { %2865 = vmatprep.subr.mxu0 %v3228_v7  ;;  %2873 = vmatprep.mubr.msk.f32.mxu0 %vm3229_vm1, %v3228_v7 }
 0x1bb   :  { %2866 = vmatpush3.msra.mxu0 %v3294_v6  ;;  %2833 = vmatpush3.msra.mxu1 %v499_v1 }
 0x1bc   :  { %2867 = vmatprep.subr.mxu0 %v3228_v7  ;;  %2834 = vmatprep.subr.mxu1 %v3228_v7 }
 0x1bd   :  { %2868 = vmatpush3.msra.mxu0 %v3306_v9  ;;  %2835 = vmatpush3.msra.mxu1 %v498_v2 }
 0x1be   :  { %2869 = vmatprep.subr.mxu0 %v3228_v7  ;;  %2836 = vmatprep.subr.mxu1 %v3228_v7 }
 0x1bf   :  { %2870 = vmatpush3.msra.mxu0 %v3320_v11  ;;  %2837 = vmatpush3.msra.mxu1 %v497_v3 }
 0x1c0   :  { %2871 = vmatprep.subr.mxu0 %v3228_v7  ;;  %2838 = vmatprep.subr.mxu1 %v3228_v7 }
 0x1c1   :  { %2872 = vmatpush3.msra.mxu0 %v3334_v13  ;;  %2839 = vmatpush3.msra.mxu1 %v496_v4 }
 0x1c2   :  { %2887 = vmatprep.subr.mxu0 %v3228_v7  ;;  %2854 = vmatprep.subr.mxu1 %v3228_v7 }
 0x271   :  { %v490_v14 = vpop.f32.mrf.mxu0 }
 0x273   :  { %v2831_v15 = vpop.f32.mrf.mxu0 }
 0x278   :  { %v417_v17 = vpop.f32.mrf.mxu1 }
 0x279   :  { %v418_v19 = vadd.f32 %v3411_v37, %v417_v17  ;;  %v3471_v21 = vpop.f32.mrf.mxu0 }
 0x27a   :  { %v2820_v23 = vpop.f32.mrf.mxu1 }
 0x27b   :  { %v494_v24 = vadd.f32 %v490_v14, %v418_v19  ;;  %v2853_v25 = vpop.f32.mrf.mxu0 }
 0x27d   :  { %3139 = vtanh.f32 %v494_v24 }
 0x28a   :  { %v3140_v26 = vpop.eup %3139 }
 0x28b   :  { %2841 = vmatmul.mubr.msk.f32.vlgmr.msra.gmra.mxu1 %vm175_vm5, %v3140_v26 }
 0x28c   :  { %2855 = vmatpush3.msra.mxu1 %v3289_v5  ;;  %2862 = vmatprep.mubr.msk.f32.mxu1 %vm3229_vm1, %v3228_v7 }
 0x28d   :  { %2856 = vmatprep.subr.mxu1 %v3228_v7 }
 0x28e   :  { %2857 = vmatpush3.msra.mxu1 %v3301_v8 }
 0x28f   :  { %2858 = vmatprep.subr.mxu1 %v3228_v7 }
 0x290   :  { %2859 = vmatpush3.msra.mxu1 %v3315_v10 }
 0x291   :  { %2860 = vmatprep.subr.mxu1 %v3228_v7 }
 0x292   :  { %2861 = vmatpush3.msra.mxu1 %v3329_v12 }
 0x293   :  { %2863 = vmatmul.mubr.msk.f32.vlgmr.msra.gmra.mxu1 %vm175_vm5, %v348_v0  ;;  %2876 = vmatprep.subr.mxu1 %v3228_v7 }
 0x294   :  { %2877 = vmatpush3.msra.mxu1 %v3383_v33  ;;  %2884 = vmatprep.mubr.msk.f32.mxu1 %vm3229_vm1, %v3228_v7 }
 0x295   :  { %2878 = vmatprep.subr.mxu1 %v3228_v7 }
 0x296   :  { %2879 = vmatpush3.msra.mxu1 %v3390_v34 }
 0x297   :  { %2880 = vmatprep.subr.mxu1 %v3228_v7 }
 0x298   :  { %2881 = vmatpush3.msra.mxu1 %v3397_v35 }
 0x299   :  { %2882 = vmatprep.subr.mxu1 %v3228_v7 }
 0x29a   :  { %2883 = vmatpush3.msra.mxu1 %v3404_v36 }
 0x29b   :  { %2885 = vmatmul.mubr.msk.f32.vlgmr.msra.gmra.mxu1 %vm175_vm5, %v3140_v26  ;;  %2898 = vmatprep.subr.mxu1 %v3228_v7 }
 0x29c   :  { %2899 = vmatpush3.msra.mxu1 %v3289_v5  ;;  %2906 = vmatprep.mubr.msk.f32.mxu1 %vm3229_vm1, %v3228_v7 }
 0x29d   :  { %2900 = vmatprep.subr.mxu1 %v3228_v7 }
 0x29e   :  { %2901 = vmatpush3.msra.mxu1 %v3301_v8 }
 0x29f   :  { %2902 = vmatprep.subr.mxu1 %v3228_v7 }
 0x2a0   :  { %2903 = vmatpush3.msra.mxu1 %v3315_v10 }
 0x2a1   :  { %2904 = vmatprep.subr.mxu1 %v3228_v7 }
 0x2a2   :  { %2905 = vmatpush3.msra.mxu1 %v3329_v12 }
 0x2a3   :  { %2920 = vmatprep.subr.mxu1 %v3228_v7 }
 0x34b   :  { %v3506_v27 = vpop.f32.mrf.mxu1 }
 0x34d   :  { %v2842_v28 = vpop.f32.mrf.mxu1 }
 0x353   :  { %v709_v29 = vpop.f32.mrf.mxu1 }
 0x354   :  { %v714_v30 = vrot.slane %v709_v29, 6  ;;  %v715_v31 = vrot.slane %v709_v29, 7  ;;  %v716_v32 = vrot.slane %v709_v29, 1  ;;  %v723_v42 = vadd.f32 %v709_v29, %v3359_v22 }
 0x355   :  { %v2864_v38 = vpop.f32.mrf.mxu1 }
 0x356   :  { %v721_v39 = vadd.f32 %v714_v30, %v3353_v18  ;;  %v722_v40 = vadd.f32 %v715_v31, %v3351_v16  ;;  %v724_v41 = vadd.f32 %v716_v32, %v3356_v20 }
 0x358   :  { %3141 = vtanh.f32 %v721_v39  ;;  %v1204_v39 = vld [vmem:[%s3859_s5 + $0x78] sm:$0xff] }
 0x359   :  { %3143 = vtanh.f32 %v722_v40  ;;  %v1203_v40 = vld [vmem:[%s3859_s5 + $0x70] sm:$0xff] }
 0x35a   :  { %3145 = vtanh.f32 %v724_v41  ;;  %v1202_v41 = vld [vmem:[%s3859_s5 + $0x68] sm:$0xff] }
 0x35b   :  { %v877_v43 = vpop.f32.mrf.mxu1  ;;  %3147 = vtanh.f32 %v723_v42  ;;  %v1201_v42 = vld [vmem:[%s3859_s5 + $0x60] sm:$0xff] }
 0x35d   :  { %v2886_v44 = vpop.f32.mrf.mxu1 }
 0x365   :  { %v3142_v45 = vpop.eup %3141 }
 0x366   :  { %v3144_v46 = vpop.eup %3143  ;;  %v733_v47 = vrot.slane %v3142_v45, 2 }
 0x367   :  { %v3146_v48 = vpop.eup %3145  ;;  %v734_v49 = vrot.slane %v3144_v46, 1 }
 0x368   :  { %v3148_v50 = vpop.eup %3147  ;;  %v737_v52 = vrot.slane %v3146_v48, 7 }
 0x369   :  { %v735_v51 = vsel %vm167_vm2, %v734_v49, %v733_v47 }
 0x36a   :  { %v736_v53 = vsel %vm170_vm3, %v3148_v50, %v735_v51 }
 0x36b   :  { %v738_v54 = vsel %vm173_vm4, %v737_v52, %v736_v53 }
 0x36c   :  { %2874 = vmatmul.mubr.msk.f32.vlgmr.msra.gmra.mxu0 %vm175_vm5, %v738_v54  ;;  %2907 = vmatmul.mubr.msk.f32.vlgmr.msra.gmra.mxu1 %vm175_vm5, %v738_v54 }
 0x36d   :  { %2921 = vmatpush3.msra.mxu1 %v3383_v33  ;;  %2895 = vmatprep.mubr.msk.f32.mxu0 %vm3229_vm1, %v3228_v7 }
 0x36e   :  { %2922 = vmatprep.subr.mxu1 %v3228_v7  ;;  %2928 = vmatprep.mubr.msk.f32.mxu1 %vm3229_vm1, %v3228_v7 }
 0x36f   :  { %2923 = vmatpush3.msra.mxu1 %v3390_v34  ;;  %2888 = vmatpush3.msra.mxu0 %v886_v55 }
 0x370   :  { %2924 = vmatprep.subr.mxu1 %v3228_v7  ;;  %2889 = vmatprep.subr.mxu0 %v3228_v7 }
 0x371   :  { %2925 = vmatpush3.msra.mxu1 %v3397_v35  ;;  %2890 = vmatpush3.msra.mxu0 %v885_v56 }
 0x372   :  { %2926 = vmatprep.subr.mxu1 %v3228_v7  ;;  %2891 = vmatprep.subr.mxu0 %v3228_v7 }
 0x373   :  { %2927 = vmatpush3.msra.mxu1 %v3404_v36  ;;  %2892 = vmatpush3.msra.mxu0 %v884_v57 }
 0x374   :  { %2942 = vmatprep.subr.mxu1 %v3228_v7  ;;  %2893 = vmatprep.subr.mxu0 %v3228_v7 }
 0x375   :  { %2894 = vmatpush3.msra.mxu0 %v883_v58 }
 0x376   :  { %2909 = vmatprep.subr.mxu0 %v3228_v7 }
 0x42c   :  { %v807_v59 = vpop.f32.mrf.mxu0  ;;  %v1027_v60 = vpop.f32.mrf.mxu1 }
 0x42d   :  { %v808_v61 = vadd.f32 %v3411_v37, %v807_v59  ;;  %v1032_v62 = vrot.slane %v1027_v60, 5  ;;  %v1033_v63 = vrot.slane %v1027_v60, 6  ;;  %v1034_v0 = vrot.slane %v1027_v60, 7 }
 0x42e   :  { %v2875_v1 = vpop.f32.mrf.mxu0  ;;  %v2908_v2 = vpop.f32.mrf.mxu1  ;;  %v1042_v17 = vadd.f32 %v1027_v60, %v3356_v20 }
 0x42f   :  { %v881_v3 = vadd.f32 %v877_v43, %v808_v61  ;;  %v1039_v4 = vadd.f32 %v1032_v62, %v3353_v18  ;;  %v1040_v14 = vadd.f32 %v1033_v63, %v3351_v16  ;;  %v1041_v15 = vadd.f32 %v1034_v0, %v3359_v22 }
 0x430   :  { %v640_v43 = vadd.f32 %v3471_v21, %v3506_v27 }
 0x431   :  { %3149 = vtanh.f32 %v881_v3 }
 0x432   :  { %3151 = vtanh.f32 %v1039_v4 }
 0x433   :  { %3153 = vtanh.f32 %v1040_v14 }
 0x434   :  { %3155 = vtanh.f32 %v1041_v15 }
 0x435   :  { %3157 = vtanh.f32 %v1042_v17 }
 0x43e   :  { %v3150_v19 = vpop.eup %3149 }
 0x43f   :  { %v3152_v23 = vpop.eup %3151  ;;  %2896 = vmatmul.mubr.msk.f32.vlgmr.msra.gmra.mxu0 %vm175_vm5, %v3150_v19  ;;  %2929 = vmatmul.mubr.msk.f32.vlgmr.msra.gmra.mxu1 %vm175_vm5, %v3150_v19 }
 0x440   :  { %v3154_v24 = vpop.eup %3153  ;;  %v1051_v25 = vrot.slane %v3152_v23, 3  ;;  %2910 = vmatpush3.msra.mxu0 %v3294_v6  ;;  %2943 = vmatpush3.msra.mxu1 %v3289_v5  ;;  %v1524_v23 = vld [vmem:[%s3859_s5 + $0x98] sm:$0xff] }
 0x441   :  { %v3156_v26 = vpop.eup %3155  ;;  %v1052_v28 = vrot.slane %v3154_v24, 2  ;;  %2911 = vmatprep.subr.mxu0 %v3228_v7  ;;  %2944 = vmatprep.subr.mxu1 %v3228_v7  ;;  %v1523_v24 = vld [vmem:[%s3859_s5 + $0x90] sm:$0xff] }
 0x442   :  { %v1054_v29 = vrot.slane %v3156_v26, 1  ;;  %2912 = vmatpush3.msra.mxu0 %v3306_v9  ;;  %2945 = vmatpush3.msra.mxu1 %v3301_v8  ;;  %v3158_v32 = vpop.eup %3157  ;;  %v1521_v26 = vld [vmem:[%s3859_s5 + $0x80] sm:$0xff] }
 0x443   :  { %2913 = vmatprep.subr.mxu0 %v3228_v7  ;;  %2946 = vmatprep.subr.mxu1 %v3228_v7  ;;  %v1053_v30 = vsel %vm167_vm2, %v1052_v28, %v1051_v25  ;;  %v1522_v25 = vld [vmem:[%s3859_s5 + $0x88] sm:$0xff] }
 0x444   :  { %2914 = vmatpush3.msra.mxu0 %v3320_v11  ;;  %2947 = vmatpush3.msra.mxu1 %v3315_v10  ;;  %v1055_v31 = vsel %vm170_vm3, %v1054_v29, %v1053_v30 }
 0x445   :  { %2915 = vmatprep.subr.mxu0 %v3228_v7  ;;  %2948 = vmatprep.subr.mxu1 %v3228_v7  ;;  %v1056_v38 = vsel %vm173_vm4, %v3158_v32, %v1055_v31 }
 0x446   :  { %2916 = vmatpush3.msra.mxu0 %v3334_v13  ;;  %2917 = vmatprep.mubr.msk.f32.mxu0 %vm3229_vm1, %v3228_v7 }
 0x447   :  { %2949 = vmatpush3.msra.mxu1 %v3329_v12  ;;  %2950 = vmatprep.mubr.msk.f32.mxu1 %vm3229_vm1, %v3228_v7 }
 0x448   :  { %2918 = vmatmul.mubr.msk.f32.vlgmr.msra.gmra.mxu0 %vm175_vm5, %v1056_v38  ;;  %2951 = vmatmul.mubr.msk.f32.vlgmr.msra.gmra.mxu1 %vm175_vm5, %v1056_v38 }
 0x449   :  { %2931 = vmatprep.subr.mxu0 %v3228_v7  ;;  %2964 = vmatprep.subr.mxu1 %v3228_v7 }
 0x44a   :  { %2965 = vmatpush3.msra.mxu1 %v3383_v33  ;;  %2939 = vmatprep.mubr.msk.f32.mxu0 %vm3229_vm1, %v3228_v7 }
 0x44b   :  { %2966 = vmatprep.subr.mxu1 %v3228_v7  ;;  %2972 = vmatprep.mubr.msk.f32.mxu1 %vm3229_vm1, %v3228_v7 }
 0x44c   :  { %2967 = vmatpush3.msra.mxu1 %v3390_v34  ;;  %2932 = vmatpush3.msra.mxu0 %v1204_v39 }
 0x44d   :  { %2968 = vmatprep.subr.mxu1 %v3228_v7  ;;  %2933 = vmatprep.subr.mxu0 %v3228_v7 }
 0x44e   :  { %2969 = vmatpush3.msra.mxu1 %v3397_v35  ;;  %2934 = vmatpush3.msra.mxu0 %v1203_v40 }
 0x44f   :  { %2970 = vmatprep.subr.mxu1 %v3228_v7  ;;  %2935 = vmatprep.subr.mxu0 %v3228_v7 }
 0x450   :  { %2971 = vmatpush3.msra.mxu1 %v3404_v36  ;;  %2936 = vmatpush3.msra.mxu0 %v1202_v41 }
 0x451   :  { %2986 = vmatprep.subr.mxu1 %v3228_v7  ;;  %2937 = vmatprep.subr.mxu0 %v3228_v7 }
 0x452   :  { %2938 = vmatpush3.msra.mxu0 %v1201_v42 }
 0x453   :  { %2953 = vmatprep.subr.mxu0 %v3228_v7 }
 0x4ff   :  { %v956_v44 = vpop.f32.mrf.mxu0  ;;  %v1195_v45 = vpop.f32.mrf.mxu1 }
 0x500   :  { %v3607_v46 = vadd.f32 %v956_v44, %v640_v43 }
 0x501   :  { %v2897_v47 = vpop.f32.mrf.mxu0  ;;  %v2930_v48 = vpop.f32.mrf.mxu1 }
 0x508   :  { %v1125_v49 = vpop.f32.mrf.mxu0  ;;  %v1345_v50 = vpop.f32.mrf.mxu1 }
 0x509   :  { %v1126_v51 = vadd.f32 %v3411_v37, %v1125_v49  ;;  %v1350_v52 = vrot.slane %v1345_v50, 4  ;;  %v1351_v53 = vrot.slane %v1345_v50, 5  ;;  %v1352_v54 = vrot.slane %v1345_v50, 6 }
 0x50a   :  { %v1353_v55 = vrot.slane %v1345_v50, 7  ;;  %v2919_v56 = vpop.f32.mrf.mxu0  ;;  %v2952_v57 = vpop.f32.mrf.mxu1 }
 0x50b   :  { %v1199_v58 = vadd.f32 %v1195_v45, %v1126_v51  ;;  %v1358_v59 = vadd.f32 %v1350_v52, %v3353_v18  ;;  %v1359_v21 = vadd.f32 %v1351_v53, %v3351_v16  ;;  %v1360_v27 = vadd.f32 %v1352_v54, %v3359_v22 }
 0x50c   :  { %v1361_v60 = vadd.f32 %v1353_v55, %v3356_v20 }
 0x50d   :  { %3159 = vtanh.f32 %v1199_v58 }
 0x50e   :  { %3161 = vtanh.f32 %v1358_v59 }
 0x50f   :  { %3163 = vtanh.f32 %v1359_v21 }
 0x510   :  { %3165 = vtanh.f32 %v1360_v27 }
 0x511   :  { %3167 = vtanh.f32 %v1361_v60 }
 0x51a   :  { %v3160_v61 = vpop.eup %3159 }
 0x51b   :  { %v3162_v62 = vpop.eup %3161  ;;  %2940 = vmatmul.mubr.msk.f32.vlgmr.msra.gmra.mxu0 %vm175_vm5, %v3160_v61  ;;  %2973 = vmatmul.mubr.msk.f32.vlgmr.msra.gmra.mxu1 %vm175_vm5, %v3160_v61 }
 0x51c   :  { %v3164_v63 = vpop.eup %3163  ;;  %v1370_v0 = vrot.slane %v3162_v62, 4  ;;  %2954 = vmatpush3.msra.mxu0 %v3294_v6  ;;  %2987 = vmatpush3.msra.mxu1 %v3289_v5  ;;  %v1844_v62 = vld [vmem:[%s3859_s5 + $0xb8] sm:$0xff] }
 0x51d   :  { %v3166_v1 = vpop.eup %3165  ;;  %v1371_v2 = vrot.slane %v3164_v63, 3  ;;  %2955 = vmatprep.subr.mxu0 %v3228_v7  ;;  %2988 = vmatprep.subr.mxu1 %v3228_v7  ;;  %v1843_v63 = vld [vmem:[%s3859_s5 + $0xb0] sm:$0xff] }
 0x51e   :  { %v3168_v3 = vpop.eup %3167  ;;  %v1373_v4 = vrot.slane %v3166_v1, 2  ;;  %2956 = vmatpush3.msra.mxu0 %v3306_v9  ;;  %2989 = vmatpush3.msra.mxu1 %v3301_v8  ;;  %v1841_v1 = vld [vmem:[%s3859_s5 + $0xa0] sm:$0xff] }
 0x51f   :  { %2957 = vmatprep.subr.mxu0 %v3228_v7  ;;  %2990 = vmatprep.subr.mxu1 %v3228_v7  ;;  %v1372_v14 = vsel %vm167_vm2, %v1371_v2, %v1370_v0  ;;  %v1375_v17 = vrot.slane %v3168_v3, 1  ;;  %v1842_v0 = vld [vmem:[%s3859_s5 + $0xa8] sm:$0xff] }
 0x520   :  { %2958 = vmatpush3.msra.mxu0 %v3320_v11  ;;  %2991 = vmatpush3.msra.mxu1 %v3315_v10  ;;  %v1374_v15 = vsel %vm170_vm3, %v1373_v4, %v1372_v14 }
 0x521   :  { %2959 = vmatprep.subr.mxu0 %v3228_v7  ;;  %2992 = vmatprep.subr.mxu1 %v3228_v7  ;;  %v1376_v19 = vsel %vm173_vm4, %v1375_v17, %v1374_v15 }
 0x522   :  { %2960 = vmatpush3.msra.mxu0 %v3334_v13  ;;  %2961 = vmatprep.mubr.msk.f32.mxu0 %vm3229_vm1, %v3228_v7 }
 0x523   :  { %2993 = vmatpush3.msra.mxu1 %v3329_v12  ;;  %2994 = vmatprep.mubr.msk.f32.mxu1 %vm3229_vm1, %v3228_v7 }
 0x524   :  { %2962 = vmatmul.mubr.msk.f32.vlgmr.msra.gmra.mxu0 %vm175_vm5, %v1376_v19  ;;  %2995 = vmatmul.mubr.msk.f32.vlgmr.msra.gmra.mxu1 %vm175_vm5, %v1376_v19 }
 0x525   :  { %2975 = vmatprep.subr.mxu0 %v3228_v7  ;;  %3008 = vmatprep.subr.mxu1 %v3228_v7 }
 0x526   :  { %3009 = vmatpush3.msra.mxu1 %v3383_v33  ;;  %2983 = vmatprep.mubr.msk.f32.mxu0 %vm3229_vm1, %v3228_v7 }
 0x527   :  { %3010 = vmatprep.subr.mxu1 %v3228_v7  ;;  %3016 = vmatprep.mubr.msk.f32.mxu1 %vm3229_vm1, %v3228_v7 }
 0x528   :  { %3011 = vmatpush3.msra.mxu1 %v3390_v34  ;;  %2976 = vmatpush3.msra.mxu0 %v1524_v23 }
 0x529   :  { %3012 = vmatprep.subr.mxu1 %v3228_v7  ;;  %2977 = vmatprep.subr.mxu0 %v3228_v7 }
 0x52a   :  { %3013 = vmatpush3.msra.mxu1 %v3397_v35  ;;  %2978 = vmatpush3.msra.mxu0 %v1523_v24 }
 0x52b   :  { %3014 = vmatprep.subr.mxu1 %v3228_v7  ;;  %2979 = vmatprep.subr.mxu0 %v3228_v7 }
 0x52c   :  { %3015 = vmatpush3.msra.mxu1 %v3404_v36  ;;  %2980 = vmatpush3.msra.mxu0 %v1522_v25 }
 0x52d   :  { %3030 = vmatprep.subr.mxu1 %v3228_v7  ;;  %2981 = vmatprep.subr.mxu0 %v3228_v7 }
 0x52e   :  { %2982 = vmatpush3.msra.mxu0 %v1521_v26 }
 0x52f   :  { %2997 = vmatprep.subr.mxu0 %v3228_v7 }
 0x5db   :  { %v1274_v28 = vpop.f32.mrf.mxu0  ;;  %v1515_v29 = vpop.f32.mrf.mxu1 }
 0x5dc   :  { %v3670_v30 = vadd.f32 %v1274_v28, %v3607_v46 }
 0x5dd   :  { %v2941_v31 = vpop.f32.mrf.mxu0  ;;  %v2974_v32 = vpop.f32.mrf.mxu1 }
 0x5e4   :  { %v1445_v38 = vpop.f32.mrf.mxu0  ;;  %v1665_v39 = vpop.f32.mrf.mxu1 }
 0x5e5   :  { %v1446_v40 = vadd.f32 %v3411_v37, %v1445_v38  ;;  %v1670_v41 = vrot.slane %v1665_v39, 3  ;;  %v1671_v42 = vrot.slane %v1665_v39, 4  ;;  %v1672_v43 = vrot.slane %v1665_v39, 5 }
 0x5e6   :  { %v1673_v44 = vrot.slane %v1665_v39, 6  ;;  %v2963_v45 = vpop.f32.mrf.mxu0  ;;  %v2996_v47 = vpop.f32.mrf.mxu1 }
 0x5e7   :  { %v1519_v48 = vadd.f32 %v1515_v29, %v1446_v40  ;;  %v1678_v49 = vadd.f32 %v1670_v41, %v3353_v18  ;;  %v1679_v50 = vadd.f32 %v1671_v42, %v3351_v16  ;;  %v1680_v46 = vadd.f32 %v1672_v43, %v3359_v22 }
 0x5e8   :  { %v1681_v51 = vadd.f32 %v1673_v44, %v3356_v20 }
 0x5e9   :  { %3169 = vtanh.f32 %v1519_v48 }
 0x5ea   :  { %3171 = vtanh.f32 %v1678_v49 }
 0x5eb   :  { %3173 = vtanh.f32 %v1679_v50 }
 0x5ec   :  { %3175 = vtanh.f32 %v1680_v46 }
 0x5ed   :  { %3177 = vtanh.f32 %v1681_v51 }
 0x5f6   :  { %v3170_v52 = vpop.eup %3169 }
 0x5f7   :  { %v3172_v53 = vpop.eup %3171  ;;  %2984 = vmatmul.mubr.msk.f32.vlgmr.msra.gmra.mxu0 %vm175_vm5, %v3170_v52  ;;  %3017 = vmatmul.mubr.msk.f32.vlgmr.msra.gmra.mxu1 %vm175_vm5, %v3170_v52 }
 0x5f8   :  { %v3174_v54 = vpop.eup %3173  ;;  %v1690_v55 = vrot.slane %v3172_v53, 5  ;;  %2998 = vmatpush3.msra.mxu0 %v3294_v6  ;;  %3031 = vmatpush3.msra.mxu1 %v3289_v5 }
 0x5f9   :  { %v3176_v56 = vpop.eup %3175  ;;  %v1691_v57 = vrot.slane %v3174_v54, 4  ;;  %2999 = vmatprep.subr.mxu0 %v3228_v7  ;;  %3032 = vmatprep.subr.mxu1 %v3228_v7 }
 0x5fa   :  { %v3178_v58 = vpop.eup %3177  ;;  %v1693_v59 = vrot.slane %v3176_v56, 3  ;;  %3000 = vmatpush3.msra.mxu0 %v3306_v9  ;;  %3033 = vmatpush3.msra.mxu1 %v3301_v8 }
 0x5fb   :  { %3001 = vmatprep.subr.mxu0 %v3228_v7  ;;  %3034 = vmatprep.subr.mxu1 %v3228_v7  ;;  %v1692_v21 = vsel %vm167_vm2, %v1691_v57, %v1690_v55  ;;  %v1695_v60 = vrot.slane %v3178_v58, 2 }
 0x5fc   :  { %3002 = vmatpush3.msra.mxu0 %v3320_v11  ;;  %3035 = vmatpush3.msra.mxu1 %v3315_v10  ;;  %v1694_v27 = vsel %vm170_vm3, %v1693_v59, %v1692_v21 }
 0x5fd   :  { %3003 = vmatprep.subr.mxu0 %v3228_v7  ;;  %3036 = vmatprep.subr.mxu1 %v3228_v7  ;;  %v1696_v61 = vsel %vm173_vm4, %v1695_v60, %v1694_v27 }
 0x5fe   :  { %3004 = vmatpush3.msra.mxu0 %v3334_v13  ;;  %3005 = vmatprep.mubr.msk.f32.mxu0 %vm3229_vm1, %v3228_v7 }
 0x5ff   :  { %3037 = vmatpush3.msra.mxu1 %v3329_v12  ;;  %3038 = vmatprep.mubr.msk.f32.mxu1 %vm3229_vm1, %v3228_v7 }
 0x600   :  { %3006 = vmatmul.mubr.msk.f32.vlgmr.msra.gmra.mxu0 %vm175_vm5, %v1696_v61  ;;  %3039 = vmatmul.mubr.msk.f32.vlgmr.msra.gmra.mxu1 %vm175_vm5, %v1696_v61 }
 0x601   :  { %3019 = vmatprep.subr.mxu0 %v3228_v7  ;;  %3052 = vmatprep.subr.mxu1 %v3228_v7 }
 0x602   :  { %3053 = vmatpush3.msra.mxu1 %v3383_v33  ;;  %3027 = vmatprep.mubr.msk.f32.mxu0 %vm3229_vm1, %v3228_v7 }
 0x603   :  { %3054 = vmatprep.subr.mxu1 %v3228_v7  ;;  %3060 = vmatprep.mubr.msk.f32.mxu1 %vm3229_vm1, %v3228_v7 }
 0x604   :  { %3055 = vmatpush3.msra.mxu1 %v3390_v34  ;;  %3020 = vmatpush3.msra.mxu0 %v1844_v62 }
 0x605   :  { %3056 = vmatprep.subr.mxu1 %v3228_v7  ;;  %3021 = vmatprep.subr.mxu0 %v3228_v7 }
 0x606   :  { %3057 = vmatpush3.msra.mxu1 %v3397_v35  ;;  %3022 = vmatpush3.msra.mxu0 %v1843_v63 }
 0x607   :  { %3058 = vmatprep.subr.mxu1 %v3228_v7  ;;  %3023 = vmatprep.subr.mxu0 %v3228_v7 }
 0x608   :  { %3059 = vmatpush3.msra.mxu1 %v3404_v36  ;;  %3024 = vmatpush3.msra.mxu0 %v1842_v0 }
 0x609   :  { %3074 = vmatprep.subr.mxu1 %v3228_v7  ;;  %3025 = vmatprep.subr.mxu0 %v3228_v7 }
 0x60a   :  { %3026 = vmatpush3.msra.mxu0 %v1841_v1 }
 0x60b   :  { %3041 = vmatprep.subr.mxu0 %v3228_v7 }
 0x6b7   :  { %v1594_v2 = vpop.f32.mrf.mxu0  ;;  %v1835_v3 = vpop.f32.mrf.mxu1 }
 0x6b8   :  { %v3733_v4 = vadd.f32 %v1594_v2, %v3670_v30  ;;  %v3202_v2 = vld [vmem:[%s3856_s2 + $0x10] sm:$0xff] }
 0x6b9   :  { %v2985_v14 = vpop.f32.mrf.mxu0  ;;  %v3018_v15 = vpop.f32.mrf.mxu1 }
 0x6c0   :  { %v1765_v17 = vpop.f32.mrf.mxu0  ;;  %v1985_v19 = vpop.f32.mrf.mxu1 }
 0x6c1   :  { %v1766_v23 = vadd.f32 %v3411_v37, %v1765_v17  ;;  %v1990_v24 = vrot.slane %v1985_v19, 2  ;;  %v1991_v25 = vrot.slane %v1985_v19, 3  ;;  %v1992_v26 = vrot.slane %v1985_v19, 4  ;;  %v3204_v17 = vld [vmem:[%s3856_s2] sm:$0xff] }
 0x6c2   :  { %v1993_v28 = vrot.slane %v1985_v19, 5  ;;  %v3007_v29 = vpop.f32.mrf.mxu0  ;;  %v3040_v31 = vpop.f32.mrf.mxu1 }
 0x6c3   :  { %v1839_v32 = vadd.f32 %v1835_v3, %v1766_v23  ;;  %v1998_v38 = vadd.f32 %v1990_v24, %v3353_v18  ;;  %v1999_v39 = vadd.f32 %v1991_v25, %v3351_v16  ;;  %v2000_v30 = vadd.f32 %v1992_v26, %v3359_v22  ;;  %v2484_v23 = vld [vmem:[%s3859_s5 + $0xf8] sm:$0xff]  ;;  %v2483_v24 = vld [vmem:[%s3859_s5 + $0xf0] sm:$0xff]  ;;  %v2482_v25 = vld [vmem:[%s3859_s5 + $0xe8] sm:$0xff] }
 0x6c4   :  { %v2001_v40 = vadd.f32 %v1993_v28, %v3356_v20  ;;  %v2481_v26 = vld [vmem:[%s3859_s5 + $0xe0] sm:$0xff] }
 0x6c5   :  { %3179 = vtanh.f32 %v1839_v32 }
 0x6c6   :  { %3181 = vtanh.f32 %v1998_v38 }
 0x6c7   :  { %3183 = vtanh.f32 %v1999_v39 }
 0x6c8   :  { %3185 = vtanh.f32 %v2000_v30  ;;  %v3205_v30 = vld [vmem:[%s3858_s4 + $0x1] ss:$0 sm:$0xff]  ;;  %s3206_s4 = scalar_lea.vmem %s2576_s10, 64 }
 0x6c9   :  { %3187 = vtanh.f32 %v2001_v40  ;;  %p3207_p0 = scmp.ne.s32.totalorder %s2576_s10, %s3206_s4  ;;  %p3212_p2 = scmp.lt.s32.totalorder %s3206_s4, %s3206_s4 }
 0x6cb   :  { %p3213_p3 = por %p3212_p2, %p3211_p1 }
 0x6cd   :  { %p3214_p4 = pnand %p3213_p3, %p3207_p0 }
 0x6d2   :  { %v3180_v41 = vpop.eup %3179 }
 0x6d3   :  { %v3182_v42 = vpop.eup %3181  ;;  %3028 = vmatmul.mubr.msk.f32.vlgmr.msra.gmra.mxu0 %vm175_vm5, %v3180_v41  ;;  %3061 = vmatmul.mubr.msk.f32.vlgmr.msra.gmra.mxu1 %vm175_vm5, %v3180_v41 }
 0x6d4   :  { %v3184_v43 = vpop.eup %3183  ;;  %v2010_v44 = vrot.slane %v3182_v42, 6  ;;  %3042 = vmatpush3.msra.mxu0 %v3294_v6  ;;  %3075 = vmatpush3.msra.mxu1 %v3289_v5 }
 0x6d5   :  { %v3186_v45 = vpop.eup %3185  ;;  %v2011_v47 = vrot.slane %v3184_v43, 5  ;;  %3043 = vmatprep.subr.mxu0 %v3228_v7  ;;  %3076 = vmatprep.subr.mxu1 %v3228_v7 }
 0x6d6   :  { %v3188_v48 = vpop.eup %3187  ;;  %v2013_v49 = vrot.slane %v3186_v45, 4  ;;  %3044 = vmatpush3.msra.mxu0 %v3306_v9  ;;  %3077 = vmatpush3.msra.mxu1 %v3301_v8  ;;  %v2164_v9 = vld [vmem:[%s3859_s5 + $0xd8] sm:$0xff] }
 0x6d7   :  { %3045 = vmatprep.subr.mxu0 %v3228_v7  ;;  %3078 = vmatprep.subr.mxu1 %v3228_v7  ;;  %v2012_v6 = vsel %vm167_vm2, %v2011_v47, %v2010_v44  ;;  %v2015_v50 = vrot.slane %v3188_v48, 3  ;;  %v2624_v44 = vld [vmem:[%s3860_s6] ss:$0 sm:$0xff] }
 0x6d8   :  { %3046 = vmatpush3.msra.mxu0 %v3320_v11  ;;  %3079 = vmatpush3.msra.mxu1 %v3315_v10  ;;  %v2014_v5 = vsel %vm170_vm3, %v2013_v49, %v2012_v6  ;;  %v2163_v10 = vld [vmem:[%s3859_s5 + $0xd0] sm:$0xff]  ;;  %v2162_v11 = vld [vmem:[%s3859_s5 + $0xc8] sm:$0xff] }
 0x6d9   :  { %3047 = vmatprep.subr.mxu0 %v3228_v7  ;;  %3080 = vmatprep.subr.mxu1 %v3228_v7  ;;  %v2016_v8 = vsel %vm173_vm4, %v2015_v50, %v2014_v5 }
 0x6da   :  { %3048 = vmatpush3.msra.mxu0 %v3334_v13  ;;  %3049 = vmatprep.mubr.msk.f32.mxu0 %vm3229_vm1, %v3228_v7 }
 0x6db   :  { %3081 = vmatpush3.msra.mxu1 %v3329_v12  ;;  %3082 = vmatprep.mubr.msk.f32.mxu1 %vm3229_vm1, %v3228_v7  ;;  %v2161_v12 = vld [vmem:[%s3859_s5 + $0xc0] sm:$0xff] }
 0x6dc   :  { %3050 = vmatmul.mubr.msk.f32.vlgmr.msra.gmra.mxu0 %vm175_vm5, %v2016_v8  ;;  %3083 = vmatmul.mubr.msk.f32.vlgmr.msra.gmra.mxu1 %vm175_vm5, %v2016_v8 }
 0x6dd   :  { %3063 = vmatprep.subr.mxu0 %v3228_v7  ;;  %3096 = vmatprep.subr.mxu1 %v3228_v7 }
 0x6de   :  { %3097 = vmatpush3.msra.mxu1 %v3383_v33  ;;  %3071 = vmatprep.mubr.msk.f32.mxu0 %vm3229_vm1, %v3228_v7 }
 0x6df   :  { %3098 = vmatprep.subr.mxu1 %v3228_v7  ;;  %3104 = vmatprep.mubr.msk.f32.mxu1 %vm3229_vm1, %v3228_v7 }
 0x6e0   :  { %3099 = vmatpush3.msra.mxu1 %v3390_v34  ;;  %3064 = vmatpush3.msra.mxu0 %v2164_v9 }
 0x6e1   :  { %3100 = vmatprep.subr.mxu1 %v3228_v7  ;;  %3065 = vmatprep.subr.mxu0 %v3228_v7 }
 0x6e2   :  { %3101 = vmatpush3.msra.mxu1 %v3397_v35  ;;  %3066 = vmatpush3.msra.mxu0 %v2163_v10 }
 0x6e3   :  { %3102 = vmatprep.subr.mxu1 %v3228_v7  ;;  %3067 = vmatprep.subr.mxu0 %v3228_v7 }
 0x6e4   :  { %3103 = vmatpush3.msra.mxu1 %v3404_v36  ;;  %3068 = vmatpush3.msra.mxu0 %v2162_v11 }
 0x6e5   :  { %3069 = vmatprep.subr.mxu0 %v3228_v7 }
 0x6e6   :  { %3070 = vmatpush3.msra.mxu0 %v2161_v12 }
 0x6e7   :  { %3085 = vmatprep.subr.mxu0 %v3228_v7 }
 0x793   :  { %v1914_v13 = vpop.f32.mrf.mxu0  ;;  %v2155_v33 = vpop.f32.mrf.mxu1 }
 0x794   :  { %v3795_v34 = vadd.f32 %v1914_v13, %v3733_v4  ;;  %v3203_v4 = vld [vmem:[%s3856_s2 + $0x8] sm:$0xff] }
 0x795   :  { %v3029_v35 = vpop.f32.mrf.mxu0  ;;  %v3062_v36 = vpop.f32.mrf.mxu1 }
 0x79c   :  { %v2085_v46 = vpop.f32.mrf.mxu0  ;;  %v2305_v51 = vpop.f32.mrf.mxu1 }
 0x79d   :  { %v2086_v52 = vadd.f32 %v3411_v37, %v2085_v46  ;;  %v2310_v53 = vrot.slane %v2305_v51, 1  ;;  %v2311_v54 = vrot.slane %v2305_v51, 2  ;;  %v2312_v55 = vrot.slane %v2305_v51, 3 }
 0x79e   :  { %v2313_v56 = vrot.slane %v2305_v51, 4  ;;  %v3051_v57 = vpop.f32.mrf.mxu0  ;;  %v3084_v58 = vpop.f32.mrf.mxu1 }
 0x79f   :  { %v2159_v59 = vadd.f32 %v2155_v33, %v2086_v52  ;;  %v2318_v21 = vadd.f32 %v2310_v53, %v3353_v18  ;;  %v2319_v27 = vadd.f32 %v2311_v54, %v3351_v16  ;;  %v2320_v60 = vadd.f32 %v2312_v55, %v3359_v22  ;;  %v3201_v16 = vld [vmem:[%s3856_s2 + $0x18] sm:$0xff] }
 0x7a0   :  { %v2321_v61 = vadd.f32 %v2313_v56, %v3356_v20 }
 0x7a1   :  { %3189 = vtanh.f32 %v2159_v59 }
 0x7a2   :  { %3191 = vtanh.f32 %v2318_v21 }
 0x7a3   :  { %3193 = vtanh.f32 %v2319_v27 }
 0x7a4   :  { %3195 = vtanh.f32 %v2320_v60 }
 0x7a5   :  { %3197 = vtanh.f32 %v2321_v61 }
 0x7ae   :  { %v3190_v37 = vpop.eup %3189 }
 0x7af   :  { %v3192_v62 = vpop.eup %3191  ;;  %3072 = vmatmul.mubr.msk.f32.vlgmr.msra.gmra.mxu0 %vm175_vm5, %v3190_v37  ;;  %3105 = vmatmul.mubr.msk.f32.vlgmr.msra.gmra.mxu1 %vm175_vm5, %v3190_v37 }
 0x7b0   :  { %v3194_v63 = vpop.eup %3193  ;;  %v2330_v0 = vrot.slane %v3192_v62, 7  ;;  %3086 = vmatpush3.msra.mxu0 %v3201_v16  ;;  %3093 = vmatprep.mubr.msk.f32.mxu0 %vm3229_vm1, %v3228_v7 }
 0x7b1   :  { %v3196_v18 = vpop.eup %3195  ;;  %v2331_v20 = vrot.slane %v3194_v63, 6  ;;  %3087 = vmatprep.subr.mxu0 %v3228_v7 }
 0x7b2   :  { %v3198_v22 = vpop.eup %3197  ;;  %v2333_v1 = vrot.slane %v3196_v18, 5  ;;  %3088 = vmatpush3.msra.mxu0 %v3202_v2 }
 0x7b3   :  { %3089 = vmatprep.subr.mxu0 %v3228_v7  ;;  %v2332_v3 = vsel %vm167_vm2, %v2331_v20, %v2330_v0  ;;  %v2335_v15 = vrot.slane %v3198_v22, 4 }
 0x7b4   :  { %3090 = vmatpush3.msra.mxu0 %v3203_v4  ;;  %v2334_v14 = vsel %vm170_vm3, %v2333_v1, %v2332_v3 }
 0x7b5   :  { %3091 = vmatprep.subr.mxu0 %v3228_v7  ;;  %v2336_v19 = vsel %vm173_vm4, %v2335_v15, %v2334_v14 }
 0x7b6   :  { %3092 = vmatpush3.msra.mxu0 %v3204_v17 }
 0x7b7   :  { %3094 = vmatmul.mubr.msk.f32.vlgmr.msra.gmra.mxu0 %vm175_vm5, %v2336_v19  ;;  %3107 = vmatprep.subr.mxu0 %v3228_v7 }
 0x7b8   :  { %3115 = vmatprep.mubr.msk.f32.mxu0 %vm3229_vm1, %v3228_v7  ;;  %3108 = vmatpush3.msra.mxu0 %v2484_v23 }
 0x7b9   :  { %3109 = vmatprep.subr.mxu0 %v3228_v7 }
 0x7ba   :  { %3110 = vmatpush3.msra.mxu0 %v2483_v24 }
 0x7bb   :  { %3111 = vmatprep.subr.mxu0 %v3228_v7 }
 0x7bc   :  { %3112 = vmatpush3.msra.mxu0 %v2482_v25 }
 0x7bd   :  { %3113 = vmatprep.subr.mxu0 %v3228_v7 }
 0x7be   :  { %3114 = vmatpush3.msra.mxu0 %v2481_v26 }
 0x86f   :  { %v2234_v28 = vpop.f32.mrf.mxu0  ;;  %v2475_v29 = vpop.f32.mrf.mxu1 }
 0x870   :  { %v2238_v31 = vadd.f32 %v2234_v28, %v3795_v34 }
 0x871   :  { %v3073_v32 = vpop.f32.mrf.mxu0  ;;  %v3106_v38 = vpop.f32.mrf.mxu1 }
 0x877   :  { %v2405_v39 = vpop.f32.mrf.mxu0 }
 0x878   :  { %v2406_v40 = vadd.f32 %v3205_v30, %v2405_v39 }
 0x879   :  { %v3095_v41 = vpop.f32.mrf.mxu0 }
 0x87a   :  { %v2479_v42 = vadd.f32 %v2475_v29, %v2406_v40 }
 0x87c   :  { %3199 = vtanh.f32 %v2479_v42 }
 0x889   :  { %v3200_v43 = vpop.eup %3199 }
 0x88a   :  { %3116 = vmatmul.mubr.msk.f32.vlgmr.msra.gmra.mxu0 %vm175_vm5, %v3200_v43 }
 0x94a   :  { %v2554_v7 = vpop.f32.mrf.mxu0 }
 0x94b   :  { %v2558_v45 = vadd.f32 %v2554_v7, %v2238_v31 }
 0x94c   :  { %v3117_v47 = vpop.f32.mrf.mxu0 }
 0x94d   :  { %v2566_v48 = vadd.f32 %v2624_v44, %v2558_v45 }
 0x94f   :  { %2568 = vst.msk [vmem:[#allocation2] sm:$0xf] %vm2567_vm6, %v2566_v48 }
 0x950   :  { %3217 = shalt.err (!%p3214_p4)
}
 0x951   :  { %2578 = dma.vmem_to_hbm [thread:$0]  %s2576_s10, 64, %s3861_s7, [#allocation3]  }
 0x952   :  { %3226 = dma.done.wait [#allocation3], 64  }
 0x953   :  { %3227 = vsyncadd [#allocation3], 4294967232 }
 0x954   :  { %2582 = vsyncpa [#allocation3], 1 }

</bundles_post_ra>
